<compile_context>
chip_gen: v7x
topology: tpu7x:2x2x1
jax: 0.10.0
libtpu: 0.0.40
codegen_flags: <defaults>
</compile_context>

<pallas_src>
import math

import jax
import jax.numpy as jnp
from jax.experimental import pallas as pl
from jax.experimental.pallas import tpu as pltpu


# ---------------------------------------------------------------------------
# Kernel
# ---------------------------------------------------------------------------
def gaussian_policy_kernel(x_ref, w1_ref, b1_ref, w2_ref, b2_ref,
                           wh_ref, bh_ref, eps_ref, out_ref):
    act_dim = eps_ref.shape[-1]

    # ---- MLP trunk: Linear + ReLU, Linear + ReLU (bf16 MXU operands, f32 acc)
    x = x_ref[...].astype(jnp.bfloat16)
    h1 = jnp.dot(x, w1_ref[...], preferred_element_type=jnp.float32) + b1_ref[...]
    h1 = jnp.maximum(h1, 0.0)

    h2 = jnp.dot(h1.astype(jnp.bfloat16), w2_ref[...],
                 preferred_element_type=jnp.float32) + b2_ref[...]
    h2 = jnp.maximum(h2, 0.0)

    # ---- fused head matmul -> (TB, 2*act_dim); static lane slices.
    # NOTE: act_dim=4 lives in one lane group, so this split is free.  If
    # act_dim is ever scaled past a vreg, repack w_head so mu occupies lanes
    # [0:P) and log_std [P:2P) with P = round_up(act_dim, 128).
    head = jnp.dot(h2.astype(jnp.bfloat16), wh_ref[...],
                   preferred_element_type=jnp.float32) + bh_ref[...]
    mu = head[:, :act_dim]
    log_std = jnp.clip(head[:, act_dim:], -20.0, 2.0)
    std = jnp.exp(log_std)

    eps = eps_ref[...]
    pre = mu + eps * std
    a = jnp.tanh(pre)

    # ---- tanh-Gaussian log-prob.  (pre - mu)/std == eps exactly.
    # squash correction uses a numerically stable softplus(-2*pre).
    t = -2.0 * pre
    softplus_t = jnp.maximum(t, 0.0) + jnp.log1p(jnp.exp(-jnp.abs(t)))

    # per-element constants hoisted out of the lane reduction (scalar add after)
    per_lane = 2.0 * (pre + softplus_t) - 0.5 * (eps * eps) - log_std
    const = act_dim * (0.5 * math.log(2.0 * math.pi) + 2.0 * math.log(2.0))
    logp = jnp.sum(per_lane, axis=-1, keepdims=True) - const

    # ---- lane-dense packed output block (TB, 128):
    #   one full-lane unmasked zero store, then two tiny narrow stores.
    out_ref[...] = jnp.zeros_like(out_ref)
    out_ref[:, :act_dim] = a
    out_ref[:, act_dim:act_dim + 1] = logp


# ---------------------------------------------------------------------------
# Wrapper
# ---------------------------------------------------------------------------
def _round_up(x, m):
    return (x + m - 1) // m * m


def _pick_batch_tile(batch, tb_max):
    """Batch tile: whole batch if tiny; otherwise fat tiles, but at least 2
    grid steps so v7x's second TensorCore can take half the batch."""
    if batch <= 16:
        return batch
    half = _round_up(pl.cdiv(batch, 2), 8)     # sublane-aligned half batch
    return max(8, min(tb_max, half))


def gaussian_policy_forward(x, params, eps, *, tb=2048):
    """x: [B, in_dim] f32, eps: [B, act_dim] f32.  Returns (a, logp).

    `params` must be pre-packed (weights bf16, biases f32) via prepack_params;
    no per-call dtype conversion happens here."""
    B, in_dim = x.shape
    act_dim = eps.shape[-1]
    out_w = max(128, _round_up(act_dim + 1, 128))   # lane-dense output slab
    TB = _pick_batch_tile(B, tb)

    w1, b1 = params["w1"], params["b1"]
    w2, b2 = params["w2"], params["b2"]
    wh, bh = params["w_head"], params["b_head"]

    batch_map = lambda i: (i, 0)    # tiles over batch only (contiguous HBM rows)
    const_map = lambda i: (0, 0)    # weights/biases VMEM-resident across steps

    in_specs = [
        pl.BlockSpec((TB, in_dim), batch_map),      # x
        pl.BlockSpec(w1.shape, const_map),          # w1 (bf16)
        pl.BlockSpec(b1.shape, const_map),          # b1 (f32)
        pl.BlockSpec(w2.shape, const_map),          # w2 (bf16)
        pl.BlockSpec(b2.shape, const_map),          # b2 (f32)
        pl.BlockSpec(wh.shape, const_map),          # fused mu/log_std head (bf16)
        pl.BlockSpec(bh.shape, const_map),          # head bias (f32)
        pl.BlockSpec((TB, act_dim), batch_map),     # eps
    ]
    out_specs = pl.BlockSpec((TB, out_w), batch_map)

    # explicit VMEM budget: double-buffered activation streams + resident
    # weights (both buffers), with headroom.  Stays well under v7x's 64 MiB.
    act_bytes = 2 * TB * (in_dim + act_dim + out_w) * 4
    w_bytes = 2 * (w1.size + w2.size + wh.size) * w1.dtype.itemsize
    b_bytes = 2 * (b1.size + b2.size + bh.size) * 4
    vmem_limit = int(min(48 * 1024 * 1024,
                         max(16 * 1024 * 1024,
                             1.5 * (act_bytes + w_bytes + b_bytes))))

    packed = pl.pallas_call(
        gaussian_policy_kernel,
        out_shape=jax.ShapeDtypeStruct((B, out_w), jnp.float32),
        grid=(pl.cdiv(B, TB),),
        in_specs=in_specs,
        out_specs=out_specs,
        compiler_params=pltpu.CompilerParams(
            dimension_semantics=("parallel",),
            vmem_limit_bytes=vmem_limit),
    )(x, w1, b1, w2, b2, wh, bh, eps)

    a = packed[:, :act_dim]
    logp = packed[:, act_dim:act_dim + 1]
    return a, logp


# ---------------------------------------------------------------------------
# Parameters
# ---------------------------------------------------------------------------
def init_params(key, in_dim, hidden, act_dim):
    """Synthetic init matching nn.Linear shapes, stored as [in, out] so the
    kernel computes x @ W directly.  Head is fused: [h2, 2*act_dim]."""
    h1, h2 = hidden
    keys = jax.random.split(key, 4)

    def lin(k, d_in, d_out):
        scale = 1.0 / jnp.sqrt(jnp.float32(d_in))
        w = jax.random.uniform(k, (d_in, d_out), jnp.float32, -scale, scale)
        b = jnp.zeros((1, d_out), jnp.float32)
        return w, b

    w1, b1 = lin(keys[0], in_dim, h1)
    w2, b2 = lin(keys[1], h1, h2)
    w_head, b_head = lin(keys[2], h2, 2 * act_dim)
    w_head = w_head + 0.01 * jax.random.normal(keys[3], w_head.shape, jnp.float32)
    return {"w1": w1, "b1": b1, "w2": w2, "b2": b2,
            "w_head": w_head, "b_head": b_head}


def prepack_params(params):
    """One-time pre-pack: MXU weight operands -> bf16, biases stay f32."""
    out = dict(params)
    for k in ("w1", "w2", "w_head"):
        out[k] = params[k].astype(jnp.bfloat16)
    return out


# ---------------------------------------------------------------------------
# Pure-JAX reference (same bf16-dot / f32-tail recipe, same prepacked params)
# ---------------------------------------------------------------------------
def reference_forward(x, params, eps):
    act_dim = eps.shape[-1]
    h1 = jnp.maximum(jnp.dot(x.astype(jnp.bfloat16), params["w1"],
                             preferred_element_type=jnp.float32)
                     + params["b1"], 0.0)
    h2 = jnp.maximum(jnp.dot(h1.astype(jnp.bfloat16), params["w2"],
                             preferred_element_type=jnp.float32)
                     + params["b2"], 0.0)
    head = jnp.dot(h2.astype(jnp.bfloat16), params["w_head"],
                   preferred_element_type=jnp.float32) + params["b_head"]
    mu, log_std = head[:, :act_dim], head[:, act_dim:]
    log_std = jnp.clip(log_std, -20.0, 2.0)
    std = jnp.exp(log_std)
    pre = mu + eps * std
    a = jnp.tanh(pre)
    gauss = -0.5 * ((pre - mu) / std) ** 2 - log_std - 0.5 * jnp.log(2.0 * jnp.pi)
    corr = 2.0 * (jnp.log(2.0) - pre - jax.nn.softplus(-2.0 * pre))
    logp = jnp.sum(gauss, -1, keepdims=True) - jnp.sum(corr, -1, keepdims=True)
    return a, logp


# ---------------------------------------------------------------------------
if __name__ == "__main__":
    # shapes consistent with the module: batch=8, in_dim=16,
    # hidden=[32, 32] (cfg_net hidden, relu activation), act_dim=4
    B, IN_DIM, ACT_DIM = 8, 16, 4
    HIDDEN = [32, 32]

    key = jax.random.PRNGKey(0)
    k_x, k_eps, k_p, k_x2, k_e2 = jax.random.split(key, 5)

    params = prepack_params(init_params(k_p, IN_DIM, HIDDEN, ACT_DIM))

    x = jax.random.normal(k_x, (B, IN_DIM), jnp.float32)
    eps = jax.random.normal(k_eps, (B, ACT_DIM), jnp.float32)  # torch.randn_like(mu)

    a, logp = gaussian_policy_forward(x, params, eps)
    jax.block_until_ready((a, logp))

    assert a.shape == (B, ACT_DIM) and logp.shape == (B, 1)
    assert bool(jnp.all(jnp.isfinite(a))) and bool(jnp.all(jnp.isfinite(logp)))

    a_ref, logp_ref = reference_forward(x, params, eps)
    assert bool(jnp.allclose(a, a_ref, atol=1e-3, rtol=1e-3))
    assert bool(jnp.allclose(logp, logp_ref, atol=1e-3, rtol=1e-3))

    # larger batch that is NOT a multiple of the tile: exercises the
    # multi-step "parallel" grid and masked OOB writes of the padded last block
    B2 = 300
    x2 = jax.random.normal(k_x2, (B2, IN_DIM), jnp.float32)
    eps2 = jax.random.normal(k_e2, (B2, ACT_DIM), jnp.float32)
    a2, logp2 = gaussian_policy_forward(x2, params, eps2)
    jax.block_until_ready((a2, logp2))

    a2_ref, logp2_ref = reference_forward(x2, params, eps2)
    assert a2.shape == (B2, ACT_DIM) and logp2.shape == (B2, 1)
    assert bool(jnp.allclose(a2, a2_ref, atol=1e-3, rtol=1e-3))
    assert bool(jnp.allclose(logp2, logp2_ref, atol=1e-3, rtol=1e-3))

    print("KERNEL_OK")
</pallas_src>

<mosaic_0001>
module attributes {stable_mosaic.version = 11 : i64} {
  func.func @gaussian_policy_kernel(%arg0: i32, %arg1: memref<8x16xf32, #tpu.memory_space<vmem>>, %arg2: memref<16x32xbf16, #tpu.memory_space<vmem>>, %arg3: memref<1x32xf32, #tpu.memory_space<vmem>>, %arg4: memref<32x32xbf16, #tpu.memory_space<vmem>>, %arg5: memref<1x32xf32, #tpu.memory_space<vmem>>, %arg6: memref<32x8xbf16, #tpu.memory_space<vmem>>, %arg7: memref<1x8xf32, #tpu.memory_space<vmem>>, %arg8: memref<8x4xf32, #tpu.memory_space<vmem>>, %arg9: memref<8x128xf32, #tpu.memory_space<vmem>>) attributes {dimension_semantics = [#tpu.dimension_semantics<parallel>], iteration_bounds = array<i64: 1>, scalar_prefetch = 0 : i64, scratch_operands = 0 : i64, tpu.core_type = #tpu.core_type<tc>, window_params = [{transform_indices = @transform_0, window_bounds = array<i64: 8, 16>}, {pipeline_mode = #tpu.pipeline_mode<synchronous>, transform_indices = @transform_1, window_bounds = array<i64: 16, 32>}, {pipeline_mode = #tpu.pipeline_mode<synchronous>, transform_indices = @transform_2, window_bounds = array<i64: 1, 32>}, {pipeline_mode = #tpu.pipeline_mode<synchronous>, transform_indices = @transform_3, window_bounds = array<i64: 32, 32>}, {pipeline_mode = #tpu.pipeline_mode<synchronous>, transform_indices = @transform_4, window_bounds = array<i64: 1, 32>}, {pipeline_mode = #tpu.pipeline_mode<synchronous>, transform_indices = @transform_5, window_bounds = array<i64: 32, 8>}, {pipeline_mode = #tpu.pipeline_mode<synchronous>, transform_indices = @transform_6, window_bounds = array<i64: 1, 8>}, {transform_indices = @transform_7, window_bounds = array<i64: 8, 4>}, {transform_indices = @transform_8, window_bounds = array<i64: 8, 128>}]} {
    %c0 = arith.constant 0 : index
    %c0_0 = arith.constant 0 : index
    %0 = vector.load %arg1[%c0, %c0_0] : memref<8x16xf32, #tpu.memory_space<vmem>>, vector<8x16xf32>
    %1 = arith.truncf %0 : vector<8x16xf32> to vector<8x16xbf16>
    %c0_1 = arith.constant 0 : index
    %c0_2 = arith.constant 0 : index
    %2 = vector.load %arg2[%c0_1, %c0_2] : memref<16x32xbf16, #tpu.memory_space<vmem>>, vector<16x32xbf16>
    %cst = arith.constant dense<0.000000e+00> : vector<8x32xf32>
    %3 = tpu.matmul %1, %2, %cst {dimension_numbers = #tpu.dot_dimension_numbers<[1], [0], [0], [1], [0, 0, 1, 1], [], []>} : vector<8x16xbf16>, vector<16x32xbf16>, vector<8x32xf32> -> vector<8x32xf32>
    %c0_3 = arith.constant 0 : index
    %c0_4 = arith.constant 0 : index
    %4 = vector.load %arg3[%c0_3, %c0_4] : memref<1x32xf32, #tpu.memory_space<vmem>>, vector<1x32xf32>
    %5 = vector.broadcast %4 : vector<1x32xf32> to vector<8x32xf32>
    %6 = arith.addf %3, %5 : vector<8x32xf32>
    %cst_5 = arith.constant 0.000000e+00 : f32
    %7 = vector.broadcast %cst_5 : f32 to vector<8x32xf32>
    %8 = arith.maximumf %6, %7 : vector<8x32xf32>
    %9 = arith.truncf %8 : vector<8x32xf32> to vector<8x32xbf16>
    %c0_6 = arith.constant 0 : index
    %c0_7 = arith.constant 0 : index
    %10 = vector.load %arg4[%c0_6, %c0_7] : memref<32x32xbf16, #tpu.memory_space<vmem>>, vector<32x32xbf16>
    %cst_8 = arith.constant dense<0.000000e+00> : vector<8x32xf32>
    %11 = tpu.matmul %9, %10, %cst_8 {dimension_numbers = #tpu.dot_dimension_numbers<[1], [0], [0], [1], [0, 0, 1, 1], [], []>} : vector<8x32xbf16>, vector<32x32xbf16>, vector<8x32xf32> -> vector<8x32xf32>
    %c0_9 = arith.constant 0 : index
    %c0_10 = arith.constant 0 : index
    %12 = vector.load %arg5[%c0_9, %c0_10] : memref<1x32xf32, #tpu.memory_space<vmem>>, vector<1x32xf32>
    %13 = vector.broadcast %12 : vector<1x32xf32> to vector<8x32xf32>
    %14 = arith.addf %11, %13 : vector<8x32xf32>
    %cst_11 = arith.constant 0.000000e+00 : f32
    %15 = vector.broadcast %cst_11 : f32 to vector<8x32xf32>
    %16 = arith.maximumf %14, %15 : vector<8x32xf32>
    %17 = arith.truncf %16 : vector<8x32xf32> to vector<8x32xbf16>
    %c0_12 = arith.constant 0 : index
    %c0_13 = arith.constant 0 : index
    %18 = vector.load %arg6[%c0_12, %c0_13] : memref<32x8xbf16, #tpu.memory_space<vmem>>, vector<32x8xbf16>
    %cst_14 = arith.constant dense<0.000000e+00> : vector<8x8xf32>
    %19 = tpu.matmul %17, %18, %cst_14 {dimension_numbers = #tpu.dot_dimension_numbers<[1], [0], [0], [1], [0, 0, 1, 1], [], []>} : vector<8x32xbf16>, vector<32x8xbf16>, vector<8x8xf32> -> vector<8x8xf32>
    %c0_15 = arith.constant 0 : index
    %c0_16 = arith.constant 0 : index
    %20 = vector.load %arg7[%c0_15, %c0_16] : memref<1x8xf32, #tpu.memory_space<vmem>>, vector<1x8xf32>
    %21 = vector.broadcast %20 : vector<1x8xf32> to vector<8x8xf32>
    %22 = arith.addf %19, %21 : vector<8x8xf32>
    %23 = vector.extract_strided_slice %22 {offsets = [0, 0], sizes = [8, 4], strides = [1, 1]} : vector<8x8xf32> to vector<8x4xf32>
    %24 = vector.extract_strided_slice %22 {offsets = [0, 4], sizes = [8, 4], strides = [1, 1]} : vector<8x8xf32> to vector<8x4xf32>
    %cst_17 = arith.constant -2.000000e+01 : f32
    %cst_18 = arith.constant 2.000000e+00 : f32
    %25 = vector.broadcast %cst_17 : f32 to vector<8x4xf32>
    %26 = arith.maximumf %25, %24 : vector<8x4xf32>
    %27 = vector.broadcast %cst_18 : f32 to vector<8x4xf32>
    %28 = arith.minimumf %27, %26 : vector<8x4xf32>
    %29 = math.exp %28 : vector<8x4xf32>
    %c0_19 = arith.constant 0 : index
    %c0_20 = arith.constant 0 : index
    %30 = vector.load %arg8[%c0_19, %c0_20] : memref<8x4xf32, #tpu.memory_space<vmem>>, vector<8x4xf32>
    %31 = arith.mulf %30, %29 : vector<8x4xf32>
    %32 = arith.addf %23, %31 : vector<8x4xf32>
    %33 = math.tanh %32 : vector<8x4xf32>
    %cst_21 = arith.constant -2.000000e+00 : f32
    %34 = vector.broadcast %cst_21 : f32 to vector<8x4xf32>
    %35 = arith.mulf %34, %32 : vector<8x4xf32>
    %cst_22 = arith.constant 0.000000e+00 : f32
    %36 = vector.broadcast %cst_22 : f32 to vector<8x4xf32>
    %37 = arith.maximumf %35, %36 : vector<8x4xf32>
    %38 = math.absf %35 : vector<8x4xf32>
    %cst_23 = arith.constant 0.000000e+00 : f32
    %39 = vector.broadcast %cst_23 : f32 to vector<8x4xf32>
    %40 = arith.subf %39, %38 : vector<8x4xf32>
    %41 = math.exp %40 : vector<8x4xf32>
    %42 = math.log1p %41 : vector<8x4xf32>
    %43 = arith.addf %37, %42 : vector<8x4xf32>
    %44 = arith.addf %32, %43 : vector<8x4xf32>
    %cst_24 = arith.constant 2.000000e+00 : f32
    %45 = vector.broadcast %cst_24 : f32 to vector<8x4xf32>
    %46 = arith.mulf %45, %44 : vector<8x4xf32>
    %47 = arith.mulf %30, %30 : vector<8x4xf32>
    %cst_25 = arith.constant 5.000000e-01 : f32
    %48 = vector.broadcast %cst_25 : f32 to vector<8x4xf32>
    %49 = arith.mulf %48, %47 : vector<8x4xf32>
    %50 = arith.subf %46, %49 : vector<8x4xf32>
    %51 = arith.subf %50, %28 : vector<8x4xf32>
    %cst_26 = arith.constant dense<0.000000e+00> : vector<8xf32>
    %52 = vector.multi_reduction <add>, %51, %cst_26 [1] : vector<8x4xf32> to vector<8xf32>
    %53 = vector.shape_cast %52 : vector<8xf32> to vector<8x1xf32>
    %cst_27 = arith.constant 9.220932 : f32
    %54 = vector.broadcast %cst_27 : f32 to vector<8x1xf32>
    %55 = arith.subf %53, %54 : vector<8x1xf32>
    %cst_28 = arith.constant 0.000000e+00 : f32
    %56 = vector.broadcast %cst_28 : f32 to vector<8x128xf32>
    %c0_29 = arith.constant 0 : index
    %c0_30 = arith.constant 0 : index
    %57 = vector.load %arg9[%c0_29, %c0_30] : memref<8x128xf32, #tpu.memory_space<vmem>>, vector<8x128xf32>
    tpu.vector_store %arg9[%c0_29, %c0_30], %56 {strides = array<i32>} : memref<8x128xf32, #tpu.memory_space<vmem>>, vector<8x128xf32>,
    %c0_31 = arith.constant 0 : index
    %c0_32 = arith.constant 0 : index
    %58 = vector.load %arg9[%c0_31, %c0_32] : memref<8x128xf32, #tpu.memory_space<vmem>>, vector<8x4xf32>
    tpu.vector_store %arg9[%c0_31, %c0_32], %33 {strides = array<i32>} : memref<8x128xf32, #tpu.memory_space<vmem>>, vector<8x4xf32>,
    %c0_33 = arith.constant 0 : index
    %c4 = arith.constant 4 : index
    %59 = vector.load %arg9[%c0_33, %c4] : memref<8x128xf32, #tpu.memory_space<vmem>>, vector<8x1xf32>
    tpu.vector_store %arg9[%c0_33, %c4], %55 {strides = array<i32>} : memref<8x128xf32, #tpu.memory_space<vmem>>, vector<8x1xf32>,
    return
  }
  func.func @transform_0(%arg0: i32) -> (i32, i32) {
    %c0_i32 = arith.constant 0 : i32
    %c0_i32_0 = arith.constant 0 : i32
    return %arg0, %c0_i32 : i32, i32
  }
  func.func @transform_1(%arg0: i32) -> (i32, i32) {
    %c0_i32 = arith.constant 0 : i32
    %c0_i32_0 = arith.constant 0 : i32
    %c0_i32_1 = arith.constant 0 : i32
    return %c0_i32, %c0_i32_0 : i32, i32
  }
  func.func @transform_2(%arg0: i32) -> (i32, i32) {
    %c0_i32 = arith.constant 0 : i32
    %c0_i32_0 = arith.constant 0 : i32
    %c0_i32_1 = arith.constant 0 : i32
    return %c0_i32, %c0_i32_0 : i32, i32
  }
  func.func @transform_3(%arg0: i32) -> (i32, i32) {
    %c0_i32 = arith.constant 0 : i32
    %c0_i32_0 = arith.constant 0 : i32
    %c0_i32_1 = arith.constant 0 : i32
    return %c0_i32, %c0_i32_0 : i32, i32
  }
  func.func @transform_4(%arg0: i32) -> (i32, i32) {
    %c0_i32 = arith.constant 0 : i32
    %c0_i32_0 = arith.constant 0 : i32
    %c0_i32_1 = arith.constant 0 : i32
    return %c0_i32, %c0_i32_0 : i32, i32
  }
  func.func @transform_5(%arg0: i32) -> (i32, i32) {
    %c0_i32 = arith.constant 0 : i32
    %c0_i32_0 = arith.constant 0 : i32
    %c0_i32_1 = arith.constant 0 : i32
    return %c0_i32, %c0_i32_0 : i32, i32
  }
  func.func @transform_6(%arg0: i32) -> (i32, i32) {
    %c0_i32 = arith.constant 0 : i32
    %c0_i32_0 = arith.constant 0 : i32
    %c0_i32_1 = arith.constant 0 : i32
    return %c0_i32, %c0_i32_0 : i32, i32
  }
  func.func @transform_7(%arg0: i32) -> (i32, i32) {
    %c0_i32 = arith.constant 0 : i32
    %c0_i32_0 = arith.constant 0 : i32
    return %arg0, %c0_i32 : i32, i32
  }
  func.func @transform_8(%arg0: i32) -> (i32, i32) {
    %c0_i32 = arith.constant 0 : i32
    %c0_i32_0 = arith.constant 0 : i32
    return %arg0, %c0_i32 : i32, i32
  }
}

</mosaic_0001>

<bundles_post_ra>
// kernel: tpu_custom_call.1
= control target key start
LH: loop header
LB: loop body
LE: loop exit
PB: predicated region body
PF: predicated region fallthrough
CT: control target
= control target key end

     0   :  { %v373_v1 = vmov 0.0   ;;  %vm48_vm0 = vcmask 130048   ;;  %vm374_vm1 = vmmov 0   ;;  %s466_s0 = inlined_call_operand.vmem [shape: f32[8,16], index: 0, kind: input, shape index: {}]   ;;  %s467_s1 = inlined_call_operand.vmem [shape: bf16[16,32], index: 1, kind: input, shape index: {}]   ;;  %s468_s2 = inlined_call_operand.vmem [shape: f32[1,32], index: 2, kind: input, shape index: {}]   ;;  %s469_s3 = inlined_call_operand.vmem [shape: bf16[32,32], index: 3, kind: input, shape index: {}]   ;;  %s470_s4 = inlined_call_operand.vmem [shape: f32[1,32], index: 4, kind: input, shape index: {}]   ;;  %s471_s5 = inlined_call_operand.vmem [shape: bf16[32,8], index: 5, kind: input, shape index: {}]   ;;  %s472_s6 = inlined_call_operand.vmem [shape: f32[1,8], index: 6, kind: input, shape index: {}]   ;;  %s473_s7 = inlined_call_operand.vmem [shape: f32[8,4], index: 7, kind: input, shape index: {}]   ;;  %s474_s8 = inlined_call_operand.hbm [shape: f32[8,128], index: 8, kind: output, shape index: {}]  }
   0x1   :  { %v336_v0 = vld [vmem:[%s467_s1] sm:$0xff]   ;;  %310 = vmatprep.subr.bf16.mxu0 %v373_v1  ;;  %272 = vst [vmem:[#allocation2] sm:$0xff] %v373_v1  ;;  %316 = vmatprep.subr.bf16.mxu1 %v373_v1 }
   0x2   :  { %v31_v2 = vld [vmem:[%s466_s0] sm:$0xff]  ;;  %311 = vmatpush3.bf16.msra.mxu0 %v336_v0  ;;  %312 = vmatprep.mubr.msk.bf16.mxu0 %vm374_vm1, %v373_v1 }
   0x3   :  { %v32_v3 = vpack.c.bf16 %v31_v2, %v31_v2  ;;  %320 = vmatprep.mubr.msk.bf16.mxu1 %vm374_vm1, %v373_v1  ;;  %324 = vmatprep.subr.bf16.mxu0 %v373_v1 }
   0x4   :  { %13 = vsyncpa [#allocation3], 0  ;;  %v337_v4 = vld [vmem:[%s469_s3] sm:$0xff]   ;;  %v338_v5 = vld [vmem:[%s469_s3 + $0x8] sm:$0xff]   ;;  %vm117_vm2 = vcmask 261120   ;;  %vm267_vm3 = vcmask 31744  }
   0x5   :  { %313 = vmatmul.mubr.msk.bf16.vlgmr.msra.gmra.mrb[0].mxu0 %vm48_vm0, %v32_v3  ;;  %317 = vmatpush3.bf16.msra.mxu1 %v337_v4  ;;  %v339_v6 = vld [vmem:[%s471_s5] sm:$0xff]   ;;  %v340_v15 = vld [vmem:[%s471_s5 + $0x8] sm:$0xff]   ;;  %vm274_vm5 = vcmask 39968  }
   0x6   :  { %328 = vmatprep.mubr.msk.bf16.mxu0 %vm374_vm1, %v373_v1  ;;  %318 = vmatprep.subr.bf16.mxu1 %v373_v1  ;;  %v290_v7 = vld [vmem:[%s468_s2] ss:$0 sm:$0xff] }
   0x7   :  { %325 = vmatpush3.bf16.msra.mxu0 %v339_v6  ;;  %v293_v16 = vld [vmem:[%s470_s4] ss:$0 sm:$0xff]  ;;  %s375_s4 = smov 124  }
   0x8   :  { %326 = vmatprep.subr.bf16.mxu0 %v373_v1  ;;  %v297_v24 = vld [vmem:[%s472_s6] ss:$0 sm:$0xff]  ;;  %s376_s6 = smov [#allocation2]  }
   0x9   :  { %319 = vmatpush3.bf16.msra.mxu1 %v338_v5  ;;  %v233_v34 = vld [vmem:[%s473_s7] sm:$0xff]  ;;  %s282_s7 = sshll.u32 %s376_s6, 4  ;;  %s283_s7 = int_to_ptr.vmem [resolvable:$true] %s282_s7 }
   0xa   :  { %v259_v51 = vmul.f32 %v233_v34, %v233_v34  ;;  %s349_s20 = scalar_lea.vmem %s283_s7, 128  ;;  %p354_p1 = scmp.lt.s32.totalorder %s283_s7, %s283_s7 }
   0xb   :  { %327 = vmatpush3.bf16.msra.mxu0 %v340_v15  ;;  %p350_p0 = scmp.ne.s32.totalorder %s283_s7, %s349_s20  ;;  %p355_p2 = scmp.lt.s32.totalorder %s349_s20, %s349_s20 }
   0xc   :  { %v260_v55 = vmul.f32 0.5, %v259_v51 }
   0xd   :  { %p356_p3 = por %p355_p2, %p354_p1 }
   0xf   :  { %p357_p4 = pnand %p356_p3, %p350_p0 }
  0xd8   :  { %v86_v8 = vpop.f32.mrb[0].mxu0 }
  0xd9   :  { %v87_v9 = vadd.f32 %v290_v7, %v86_v8  ;;  %v314_v10 = vpop.f32.mrb[1].mxu0 }
  0xda   :  { %v89_v11 = vpop.f32.mrb[2].mxu0 }
  0xdb   :  { %v92_v12 = vmax.f32 %v87_v9, 0.0  ;;  %v315_v13 = vpop.f32.mrb[3].mxu0 }
  0xdd   :  { %v93_v14 = vpack.c.bf16 %v92_v12, %v92_v12 }
  0xdf   :  { %321 = vmatmul.mubr.msk.bf16.vlgmr.msra.gmra.mrb[0].mxu1 %vm117_vm2, %v93_v14 }
 0x1b2   :  { %v155_v17 = vpop.f32.mrb[0].mxu1 }
 0x1b3   :  { %v156_v18 = vadd.f32 %v293_v16, %v155_v17  ;;  %v322_v19 = vpop.f32.mrb[1].mxu1 }
 0x1b4   :  { %v158_v20 = vpop.f32.mrb[2].mxu1 }
 0x1b5   :  { %v161_v21 = vmax.f32 %v156_v18, 0.0  ;;  %v323_v22 = vpop.f32.mrb[3].mxu1 }
 0x1b7   :  { %v162_v23 = vpack.c.bf16 %v161_v21, %v161_v21 }
 0x1b9   :  { %329 = vmatmul.mubr.msk.bf16.vlgmr.msra.gmra.mrb[4].mxu0 %vm117_vm2, %v162_v23 }
 0x28c   :  { %v223_v25 = vpop.f32.mrb[4].mxu0 }
 0x28d   :  { %v224_v26 = vadd.f32 %v297_v24, %v223_v25  ;;  %v330_v27 = vpop.f32.mrb[5].mxu0 }
 0x28e   :  { %v226_v28 = vpop.f32.mrb[6].mxu0 }
 0x28f   :  { %v229_v29 = vmax.f32 %v224_v26, -20.0  ;;  %v331_v30 = vpop.f32.mrb[7].mxu0 }
 0x291   :  { %v230_v31 = vmin.f32 %v229_v29, 2.0 }
 0x293   :  { %v231_v32 = vmul.f32 1.442695, %v230_v31 }
 0x295   :  { %341 = vpow2.f32 %v231_v32 }
 0x29f   :  { %v342_v33 = vpop.eup %341 }
 0x2a0   :  { %235 = vrot.lane.b32.xlu0 %v342_v33, %s375_s4 }
 0x2a4   :  { %263 = vrot.lane.b32.xlu0 %v230_v31, %s375_s4 }
 0x312   :  { %v236_v35 = vpop.permute.xlu0 %235 }
 0x313   :  { %v238_v36 = vmul.f32 %v236_v35, %v233_v34 }
 0x315   :  { %v239_v37 = vadd.f32 %v238_v36, %v224_v26 }
 0x316   :  { %v264_v59 = vpop.permute.xlu0 %263 }
 0x317   :  { %343 = vtanh.f32 %v239_v37  ;;  %v241_v38 = vmul.f32 -2.0, %v239_v37 }
 0x319   :  { %v243_v39 = vand.u32 2147483647, %v241_v38  ;;  %v242_v52 = vmax.f32 %v241_v38, 0.0 }
 0x31b   :  { %v244_v40 = vsub.f32 0.0, %v243_v39 }
 0x31d   :  { %v245_v41 = vmul.f32 1.442695, %v244_v40 }
 0x31f   :  { %345 = vpow2.f32 %v245_v41 }
 0x321   :  { %v344_v42 = vpop.eup %343 }
 0x322   :  { %273 = vst.msk [vmem:[#allocation2] sm:$0xff] %vm267_vm3, %v344_v42 }
 0x329   :  { %v346_v43 = vpop.eup %345 }
 0x32a   :  { %v247_v44 = vadd.f32 1.0, %v346_v43  ;;  %v250_v45 = vmul.f32 -0.5, %v346_v43  ;;  %v253_v47 = vand.u32 2147483647, %v346_v43 }
 0x32c   :  { %347 = vlog2.f32 %v247_v44  ;;  %v251_v46 = vadd.f32 1.0, %v250_v45  ;;  %vm254_vm4 = vcmp.lt.f32.partialorder %v253_v47, 0.0004427343 }
 0x32e   :  { %v252_v50 = vmul.f32 %v346_v43, %v251_v46 }
 0x336   :  { %v348_v48 = vpop.eup %347 }
 0x337   :  { %v249_v49 = vmul.f32 0.6931472, %v348_v48 }
 0x339   :  { %v255_v53 = vsel %vm254_vm4, %v252_v50, %v249_v49 }
 0x33a   :  { %v256_v54 = vadd.f32 %v255_v53, %v242_v52 }
 0x33c   :  { %v257_v56 = vadd.f32 %v256_v54, %v239_v37 }
 0x33e   :  { %v258_v57 = vmul.f32 2.0, %v257_v56 }
 0x340   :  { %v261_v58 = vsub.f32 %v258_v57, %v260_v55 }
 0x342   :  { %v266_v60 = vsub.f32 %v261_v58, %v264_v59 }
 0x344   :  { %v268_v61 = vsel %vm267_vm3, %v266_v60, 0.0 }
 0x345   :  { %269 = vadd.xlane.f32.xlu1 %v268_v61 }
 0x3d2   :  { %v270_v62 = vpop.xlane.xlu1 %269 }
 0x3d3   :  { %v301_v63 = vadd.f32 -9.220932, %v270_v62 }
 0x3d5   :  { %275 = vst.msk [vmem:[#allocation2] sm:$0xff] %vm274_vm5, %v301_v63 }
 0x3d6   :  { %360 = shalt.err (!%p357_p4)
}
 0x3d7   :  { %s361_s23 = scalar_lea.hbm %s474_s8, 128 }
 0x3d8   :  { %p362_p5 = scmp.ne.s32.totalorder %s474_s8, %s361_s23  ;;  %p365_p6 = scmp.lt.u32.totalorder %s361_s23, %s474_s8 }
 0x3da   :  { %p367_p7 = pnand %p365_p6, %p362_p5 }
 0x3dc   :  { %370 = shalt.err (!%p367_p7)
}
 0x3dd   :  { %285 = dma.vmem_to_hbm [thread:$0]  %s283_s7, 128, %s474_s8, [#allocation3]  }
 0x3de   :  { %371 = dma.done.wait [#allocation3], 128  }
 0x3df   :  { %372 = vsyncadd [#allocation3], 4294967168 }
 0x3e0   :  { %289 = vsyncpa [#allocation3], 1 }

</bundles_post_ra>
